<compile_context>
chip_gen: v5e
topology: v5e:2x2
jax: 0.10.0
libtpu: 0.0.40
codegen_flags: <defaults>
</compile_context>

<pallas_src>
import jax
import jax.numpy as jnp
from jax.experimental import pallas as pl
from jax.experimental.pallas import tpu as pltpu

LANE = 128      # vreg lane width (last dim)
TM_PREF = 8192  # preferred rows per grid step (4 MiB f32 per input block)
CHUNK = 256     # rows per in-kernel accumulation chunk (128 KiB f32)


def _cdiv(a, b):
    return -(-a // b)


def _round_down(a, b):
    return (a // b) * b


def _round_up(a, b):
    return _cdiv(a, b) * b


def _bce_elem_f32(x, y):
    """Numerically stable BCE-with-logits elementwise term (PyTorch formula)."""
    x = x.astype(jnp.float32)
    y = y.astype(jnp.float32)
    return jnp.maximum(x, 0.0) - x * y + jnp.log1p(jnp.exp(-jnp.abs(x)))


def _make_partial_kernel(tm, chunk, acc_rows, rows_main, needs_mask):
    """Kernel producing one lane-dense (8,128) partial sum per grid step."""
    n_chunks = tm // chunk

    def kernel(pred_ref, label_ref, out_ref):
        # Number of valid rows in this block (only needed for the last,
        # partial block; `needs_mask` is a trace-time constant).
        valid_rows = (rows_main - pl.program_id(0) * tm) if needs_mask else None

        def chunk_body(c, acc):
            r0 = c * chunk
            if not isinstance(r0, int):
                r0 = pl.multiple_of(r0, chunk)
            x = pred_ref[pl.ds(r0, chunk), :]
            y = label_ref[pl.ds(r0, chunk), :]
            elem = _bce_elem_f32(x, y)
            if needs_mask:
                row = r0 + jax.lax.broadcasted_iota(jnp.int32, (chunk, 1), 0)
                # jnp.where zeroes out garbage (possibly NaN) rows beyond the
                # valid region of a partial boundary block.
                elem = jnp.where(row < valid_rows, elem, 0.0)
            # Sublane-aligned reshape keeps (8,128) vreg tiles intact:
            # pure VPU vreg adds, short dependency chains into a tiny acc.
            part = jnp.sum(elem.reshape(chunk // acc_rows, acc_rows, LANE), axis=0)
            return acc + part

        acc0 = jnp.zeros((acc_rows, LANE), jnp.float32)
        if n_chunks == 1:
            acc = chunk_body(0, acc0)
        else:
            unroll = n_chunks if n_chunks <= 8 else 8
            acc = jax.lax.fori_loop(0, n_chunks, chunk_body, acc0, unroll=unroll)

        out_ref[...] = jnp.sum(acc.reshape(acc_rows // 8, 8, LANE), axis=0)

    return kernel


def bce_with_logits_loss(pred: jax.Array, label: jax.Array) -> jax.Array:
    """Mean-reduced BCE-with-logits, with batch-size alignment."""
    # --- align_pred_label_batch_size (plain JAX glue; static shapes) ---
    b = min(pred.shape[0], label.shape[0])
    pred = pred[:b]
    label = label[:b]
    assert pred.shape == label.shape, "pred/label must match after alignment"

    n = pred.size
    flat_p = pred.reshape(-1)    # no copy for contiguous arrays; native dtype
    flat_l = label.reshape(-1)

    rows_total = n // LANE
    rows_main = (rows_total // 8) * 8     # sublane-aligned rows go to the kernel

    if rows_main == 0:
        # Too small for a (8,128)-tiled kernel: pure-JAX fallback.
        total = jnp.sum(_bce_elem_f32(flat_p, flat_l))
        return total / jnp.float32(n)

    # --- pick the row tile (tm) ---
    if rows_main >= CHUNK:
        chunk = CHUNK
        tm = min(
            TM_PREF,
            _round_down(rows_main, CHUNK),          # multiple of CHUNK, <= rows_main
            _round_up(_cdiv(rows_main, 2), CHUNK),  # keep >= 2 grid steps (megacore)
        )
    else:
        chunk = rows_main                           # small input: single chunk
        tm = rows_main
    acc_rows = 32 if chunk % 32 == 0 else 8         # 4 vregs (or 1) of accumulator

    grid_n = _cdiv(rows_main, tm)
    needs_mask = (rows_main % tm) != 0              # last block partial -> mask in-kernel
    n_main = rows_main * LANE

    p2 = flat_p[:n_main].reshape(rows_main, LANE)
    l2 = flat_l[:n_main].reshape(rows_main, LANE)

    itemsize = pred.dtype.itemsize + label.dtype.itemsize
    # Double-buffered input blocks + headroom; explicit so big tiles fit on
    # v5e's 16 MiB scoped default while staying well under v7x's 64 MiB VMEM.
    vmem_limit = int(min(max(2 * tm * LANE * itemsize + (8 << 20), 32 << 20), 48 << 20))

    kernel = _make_partial_kernel(tm, chunk, acc_rows, rows_main, needs_mask)

    partials = pl.pallas_call(
        kernel,
        out_shape=jax.ShapeDtypeStruct((grid_n * 8, LANE), jnp.float32),
        grid=(grid_n,),
        in_specs=[
            pl.BlockSpec((tm, LANE), lambda i: (i, 0)),
            pl.BlockSpec((tm, LANE), lambda i: (i, 0)),
        ],
        # Lane-dense (8,128) partial per step -> unmasked vst; no cross-step
        # dependency -> "parallel" (shards across both TCs on v7x).
        out_specs=pl.BlockSpec((8, LANE), lambda i: (i, 0)),
        compiler_params=pltpu.CompilerParams(
            dimension_semantics=("parallel",),
            vmem_limit_bytes=vmem_limit),
        cost_estimate=pl.CostEstimate(
            flops=6 * n_main,
            transcendentals=2 * n_main,
            bytes_accessed=int(n_main * itemsize + grid_n * 8 * LANE * 4)),
    )(p2, l2)

    main_sum = jnp.sum(partials)
    # Sub-(8,128) remainder (< 1152 elements) handled in plain JAX — no pad.
    tail_sum = jnp.sum(_bce_elem_f32(flat_p[n_main:], flat_l[n_main:]))

    # reduction="mean" over all (aligned) elements.
    return (main_sum + tail_sum) / jnp.float32(n)


def _reference_loss(pred, label):
    b = min(pred.shape[0], label.shape[0])
    return jnp.mean(_bce_elem_f32(pred[:b], label[:b]))


if __name__ == "__main__":
    key = jax.random.PRNGKey(0)
    k1, k2 = jax.random.split(key)

    # Small NCHW prediction tensor; label has a larger batch so the
    # align_pred_label_batch_size truncation path is exercised.
    pred = jax.random.normal(k1, (2, 4, 16, 16), dtype=jnp.float32)
    label = jax.random.uniform(k2, (3, 4, 16, 16), dtype=jnp.float32)

    loss = jax.block_until_ready(bce_with_logits_loss(pred, label))
    ref = jax.block_until_ready(_reference_loss(pred, label))
    assert jnp.allclose(loss, ref, rtol=1e-5, atol=1e-6), (loss, ref)

    print("KERNEL_OK")
</pallas_src>

<mosaic_0001>
module attributes {stable_mosaic.version = 11 : i64} {
  func.func @kernel(%arg0: i32, %arg1: memref<16x128xf32, #tpu.memory_space<vmem>>, %arg2: memref<16x128xf32, #tpu.memory_space<vmem>>, %arg3: memref<8x128xf32, #tpu.memory_space<vmem>>) attributes {dimension_semantics = [#tpu.dimension_semantics<parallel>], iteration_bounds = array<i64: 1>, scalar_prefetch = 0 : i64, scratch_operands = 0 : i64, tpu.core_type = #tpu.core_type<tc>, window_params = [{transform_indices = @transform_0, window_bounds = array<i64: 16, 128>}, {transform_indices = @transform_1, window_bounds = array<i64: 16, 128>}, {transform_indices = @transform_2, window_bounds = array<i64: 8, 128>}]} {
    %cst = arith.constant 0.000000e+00 : f32
    %0 = vector.broadcast %cst : f32 to vector<8x128xf32>
    %c0 = arith.constant 0 : index
    %c0_0 = arith.constant 0 : index
    %1 = vector.load %arg1[%c0, %c0_0] : memref<16x128xf32, #tpu.memory_space<vmem>>, vector<16x128xf32>
    %c0_1 = arith.constant 0 : index
    %c0_2 = arith.constant 0 : index
    %2 = vector.load %arg2[%c0_1, %c0_2] : memref<16x128xf32, #tpu.memory_space<vmem>>, vector<16x128xf32>
    %cst_3 = arith.constant 0.000000e+00 : f32
    %3 = vector.broadcast %cst_3 : f32 to vector<16x128xf32>
    %4 = arith.maximumf %1, %3 : vector<16x128xf32>
    %5 = arith.mulf %1, %2 : vector<16x128xf32>
    %6 = arith.subf %4, %5 : vector<16x128xf32>
    %7 = math.absf %1 : vector<16x128xf32>
    %cst_4 = arith.constant 0.000000e+00 : f32
    %8 = vector.broadcast %cst_4 : f32 to vector<16x128xf32>
    %9 = arith.subf %8, %7 : vector<16x128xf32>
    %10 = math.exp %9 : vector<16x128xf32>
    %11 = math.log1p %10 : vector<16x128xf32>
    %12 = arith.addf %6, %11 : vector<16x128xf32>
    %13 = vector.shape_cast %12 : vector<16x128xf32> to vector<2x8x128xf32>
    %cst_5 = arith.constant dense<0.000000e+00> : vector<8x128xf32>
    %14 = vector.multi_reduction <add>, %13, %cst_5 [0] : vector<2x8x128xf32> to vector<8x128xf32>
    %15 = arith.addf %0, %14 : vector<8x128xf32>
    %16 = vector.shape_cast %15 : vector<8x128xf32> to vector<1x8x128xf32>
    %cst_6 = arith.constant dense<0.000000e+00> : vector<8x128xf32>
    %17 = vector.multi_reduction <add>, %16, %cst_6 [0] : vector<1x8x128xf32> to vector<8x128xf32>
    %c0_7 = arith.constant 0 : index
    %c0_8 = arith.constant 0 : index
    %18 = vector.load %arg3[%c0_7, %c0_8] : memref<8x128xf32, #tpu.memory_space<vmem>>, vector<8x128xf32>
    tpu.vector_store %arg3[%c0_7, %c0_8], %17 {strides = array<i32>} : memref<8x128xf32, #tpu.memory_space<vmem>>, vector<8x128xf32>,
    return
  }
  func.func @transform_0(%arg0: i32) -> (i32, i32) {
    %c0_i32 = arith.constant 0 : i32
    %c0_i32_0 = arith.constant 0 : i32
    return %arg0, %c0_i32 : i32, i32
  }
  func.func @transform_1(%arg0: i32) -> (i32, i32) {
    %c0_i32 = arith.constant 0 : i32
    %c0_i32_0 = arith.constant 0 : i32
    return %arg0, %c0_i32 : i32, i32
  }
  func.func @transform_2(%arg0: i32) -> (i32, i32) {
    %c0_i32 = arith.constant 0 : i32
    %c0_i32_0 = arith.constant 0 : i32
    return %arg0, %c0_i32 : i32, i32
  }
}

</mosaic_0001>

<bundles_post_ra>
// kernel: tpu_custom_call.1
= control target key start
LH: loop header
LB: loop body
LE: loop exit
PB: predicated region body
PF: predicated region fallthrough
CT: control target
= control target key end

     0   :  { %7 = vsyncpa [#allocation3], 0  ;;  %s224_s0 = inlined_call_operand.hbm [shape: f32[16,128], index: 0, kind: input, shape index: {}]   ;;  %s225_s1 = inlined_call_operand.hbm [shape: f32[16,128], index: 1, kind: input, shape index: {}]   ;;  %s226_s2 = inlined_call_operand.hbm [shape: f32[8,128], index: 2, kind: output, shape index: {}]  }
   0x1   :  { %8 = vsyncpa [#allocation6], 0 }
   0x2   :  { %9 = vsyncpa [#allocation4], 0  ;;  %s14_s11 = sshll.u32 %s224_s0, 4  ;;  %s195_s12 = smov [#allocation2]   ;;  %s15_s11 = int_to_ptr.hbm [resolvable:$true] %s14_s11 }
   0x3   :  { %s16_s13 = sshll.u32 %s195_s12, 4  ;;  %s27_s16 = sshll.u32 %s225_s1, 4  ;;  %s17_s13 = int_to_ptr.vmem [resolvable:$true] %s16_s13  ;;  %s28_s16 = int_to_ptr.hbm [resolvable:$true] %s27_s16 }
   0x4   :  { %s196_s17 = smov 128   ;;  %s197_s18 = smov 8  }
   0x5   :  { %22 = dma.hbm_to_vmem [thread:$0]  %s15_s11, 256, %s17_s13, [#allocation3], %s196_s17, %s196_s17, %s197_s18  }
   0x6   :  { %s198_s19 = smov [#allocation5]  }
   0x7   :  { %s29_s20 = sshll.u32 %s198_s19, 4  ;;  %s30_s20 = int_to_ptr.vmem [resolvable:$true] %s29_s20 }
   0x8   :  { %35 = dma.hbm_to_vmem [thread:$0]  %s28_s16, 256, %s30_s20, [#allocation6], %s196_s17, %s196_s17, %s197_s18  }
   0x9   :  { %189 = dma.done.wait [#allocation3], 256  }
   0xa   :  { %190 = vsyncadd [#allocation3], 4294967040 }
   0xb   :  { %191 = dma.done.wait [#allocation6], 256  }
   0xc   :  { %192 = vsyncadd [#allocation6], 4294967040  ;;  %v44_v0 = vld [vmem:[#allocation2] sm:$0xff]  ;;  %v45_v1 = vld [vmem:[#allocation2 + $0x8] sm:$0xff]  ;;  %s199_s0 = smov [#allocation7]   ;;  %s93_s23 = sshll.u32 %s226_s2, 4  ;;  %s94_s23 = int_to_ptr.hbm [resolvable:$true] %s93_s23 }
   0xd   :  { %v54_v2 = vand.u32 2147483647, %v44_v0  ;;  %v55_v3 = vand.u32 2147483647, %v45_v1  ;;  %v46_v12 = vld [vmem:[#allocation5] sm:$0xff]  ;;  %v47_v15 = vld [vmem:[#allocation5 + $0x8] sm:$0xff] }
   0xe   :  { %v48_v17 = vmax.f32 %v44_v0, 0.0  ;;  %v50_v18 = vmul.f32 %v46_v12, %v44_v0  ;;  %v49_v21 = vmax.f32 %v45_v1, 0.0  ;;  %v51_v22 = vmul.f32 %v47_v15, %v45_v1  ;;  %s91_s1 = sshll.u32 %s199_s0, 4  ;;  %s92_s1 = int_to_ptr.vmem [resolvable:$true] %s91_s1 }
   0xf   :  { %v56_v4 = vsub.f32 0.0, %v54_v2  ;;  %v57_v5 = vsub.f32 0.0, %v55_v3 }
  0x10   :  { %v52_v26 = vsub.f32 %v48_v17, %v50_v18  ;;  %v53_v29 = vsub.f32 %v49_v21, %v51_v22 }
  0x11   :  { %v58_v6 = vmul.f32 1.442695, %v56_v4  ;;  %v60_v7 = vmul.f32 1.442695, %v57_v5 }
  0x13   :  { %109 = vpow2.f32 %v58_v6 }
  0x14   :  { %111 = vpow2.f32 %v60_v7 }
  0x19   :  { %v110_v8 = vpop.eup %109 }
  0x1a   :  { %v112_v9 = vpop.eup %111  ;;  %v62_v10 = vadd.f32 1.0, %v110_v8  ;;  %v65_v11 = vmul.f32 -0.5, %v110_v8  ;;  %v68_v19 = vand.u32 2147483647, %v110_v8 }
  0x1b   :  { %v71_v13 = vadd.f32 1.0, %v112_v9  ;;  %v74_v14 = vmul.f32 -0.5, %v112_v9  ;;  %v77_v23 = vand.u32 2147483647, %v112_v9 }
  0x1c   :  { %113 = vlog2.f32 %v62_v10  ;;  %v66_v16 = vadd.f32 1.0, %v65_v11  ;;  %vm69_vm0 = vcmp.lt.f32.partialorder %v68_v19, 0.0004427343 }
  0x1d   :  { %115 = vlog2.f32 %v71_v13  ;;  %v75_v20 = vadd.f32 1.0, %v74_v14  ;;  %vm78_vm1 = vcmp.lt.f32.partialorder %v77_v23, 0.0004427343 }
  0x1e   :  { %v67_v24 = vmul.f32 %v110_v8, %v66_v16 }
  0x1f   :  { %v76_v27 = vmul.f32 %v112_v9, %v75_v20 }
  0x22   :  { %v114_v25 = vpop.eup %113 }
  0x23   :  { %v116_v28 = vpop.eup %115  ;;  %v64_v30 = vmul.f32 0.6931472, %v114_v25 }
  0x24   :  { %v73_v31 = vmul.f32 0.6931472, %v116_v28 }
  0x25   :  { %v70_v32 = vsel %vm69_vm0, %v67_v24, %v64_v30 }
  0x26   :  { %v79_v33 = vsel %vm78_vm1, %v76_v27, %v73_v31  ;;  %v80_v34 = vadd.f32 %v70_v32, %v52_v26 }
  0x27   :  { %v81_v35 = vadd.f32 %v79_v33, %v53_v29 }
  0x29   :  { %v82_v36 = vadd.f32 %v81_v35, %v80_v34 }
  0x2b   :  { %85 = vst [vmem:[#allocation7] sm:$0xff] %v82_v36 }
  0x2c   :  { %96 = dma.vmem_to_hbm [thread:$0]  %s92_s1, 128, %s94_s23, [#allocation4]  }
  0x2d   :  { %193 = dma.done.wait [#allocation4], 128  }
  0x2e   :  { %194 = vsyncadd [#allocation4], 4294967168 }
  0x2f   :  { %101 = vsyncpa [#allocation3], 1 }
  0x30   :  { %102 = vsyncpa [#allocation6], 1 }
  0x31   :  { %103 = vsyncpa [#allocation4], 1 }

</bundles_post_ra>
